<compile_context>
chip_gen: v7x
topology: tpu7x:2x2x1
jax: 0.10.0
libtpu: 0.0.40
codegen_flags: <defaults>
</compile_context>

<pallas_src>
import functools

import numpy as np
import jax
import jax.numpy as jnp
from jax import lax
from jax.experimental import pallas as pl
from jax.experimental.pallas import tpu as pltpu

# Deterministic "config" parameters (synthetic, no checkpoint load).
M0, M1 = 1.0, 2.0          # link masses
L0, L1 = 1.0, 1.0          # link lengths (used only to build consistent inputs)
G = 9.8                    # gravity
STATE = 8                  # [q0, q1, q2, q3, qt0, qt1, qt2, qt3]
LANE = 128                 # TPU vreg lane width
CHUNK = 8                  # sublane rows per inner step (1 f32 vreg per plane)


def _round_up(x, n):
    return ((x + n - 1) // n) * n


def _choose_row_tile(n_rows, max_row_tile):
    """Pick a legal row tile: multiple of 8 (or the full dim for tiny inputs),
    never larger than the array, and giving >=2 grid steps when possible so
    megacore (v7x) sharding via dimension_semantics actually engages."""
    max_row_tile = max(8, (int(max_row_tile) // 8) * 8)
    if n_rows <= 8:
        return n_rows                         # single block spanning full dim
    half = ((n_rows + 1) // 2 + 7) // 8 * 8   # aim for >= 2 grid steps
    full8 = (n_rows // 8) * 8                 # never exceed the array dim
    return max(8, min(max_row_tile, half, full8))


def _dae2ode_kernel(x_ref, o_ref, *, m0, m1, g, chunk):
    """x_ref / o_ref: (STATE, row_tile, LANE) blocks, batch dense on
    sublanes+lanes.  Inner loop walks `chunk` sublane rows at a time so the
    live vreg working set stays ~25-30 vregs (no spills)."""
    inv_m0 = 1.0 / m0
    inv_m1 = 1.0 / m1
    c00 = 4.0 * inv_m0                 # L00 / L01 coefficient
    c11 = 4.0 * (inv_m0 + inv_m1)      # L11 coefficient
    two_inv_m0 = 2.0 * inv_m0
    two_inv_m1 = 2.0 * inv_m1
    od = o_ref.dtype

    n_chunks = x_ref.shape[1] // chunk  # exact by construction

    def body(c, carry):
        start = c * chunk
        if not isinstance(start, int):
            start = pl.multiple_of(start, chunk)
        rows = pl.ds(start, chunk)

        # Load velocity planes once; passthrough straight to the output ref
        # (no cast round-trip), then reuse them for the dynamics.
        v0r = x_ref[4, rows, :]
        v1r = x_ref[5, rows, :]
        v2r = x_ref[6, rows, :]
        v3r = x_ref[7, rows, :]
        o_ref[0, rows, :] = v0r
        o_ref[1, rows, :] = v1r
        o_ref[2, rows, :] = v2r
        o_ref[3, rows, :] = v3r

        q0 = x_ref[0, rows, :].astype(jnp.float32)
        q1 = x_ref[1, rows, :].astype(jnp.float32)
        q2 = x_ref[2, rows, :].astype(jnp.float32)
        q3 = x_ref[3, rows, :].astype(jnp.float32)
        v0 = v0r.astype(jnp.float32)
        v1 = v1r.astype(jnp.float32)
        v2 = v2r.astype(jnp.float32)
        v3 = v3r.astype(jnp.float32)

        dq0 = q0 - q2
        dq1 = q1 - q3
        dv0 = v0 - v2
        dv1 = v1 - v3

        # L = phi_q Minv phi_q^T (2x2, symmetric); structural zeros removed.
        L00 = c00 * (q0 * q0 + q1 * q1)
        L01 = c00 * (q0 * dq0 + q1 * dq1)
        L11 = c11 * (dq0 * dq0 + dq1 * dq1)

        # R = phi_q Minv F + gamma.  Gravity terms of R1 cancel exactly:
        #   row0: phi_q0 . MinvF = -2 g q1 ; gamma0 = 2 (v0^2 + v1^2)
        #   row1: phi_q1 . MinvF = 0       ; gamma1 = 2 ((v0-v2)^2 + (v1-v3)^2)
        R0 = 2.0 * (v0 * v0 + v1 * v1) - (2.0 * g) * q1
        R1 = 2.0 * (dv0 * dv0 + dv1 * dv1)

        # lam = L^{-1} R via Cramer's rule; exact f32 divide (EUP-backed).
        det = L00 * L11 - L01 * L01
        inv_det = 1.0 / det
        lam0 = (L11 * R0 - L01 * R1) * inv_det
        lam1 = (L00 * R1 - L01 * R0) * inv_det

        # qtt = Minv (F - phi_q^T lam); structural zeros removed.
        qtt0 = -two_inv_m0 * (q0 * lam0 + dq0 * lam1)
        qtt1 = -g - two_inv_m0 * (q1 * lam0 + dq1 * lam1)
        qtt2 = two_inv_m1 * (dq0 * lam1)
        qtt3 = -g + two_inv_m1 * (dq1 * lam1)

        o_ref[4, rows, :] = qtt0.astype(od)
        o_ref[5, rows, :] = qtt1.astype(od)
        o_ref[6, rows, :] = qtt2.astype(od)
        o_ref[7, rows, :] = qtt3.astype(od)
        return carry

    lax.fori_loop(0, n_chunks, body, 0)


def dae2ode_forward_planes(t, planes, *, m=(M0, M1), g=G, max_row_tile=512):
    """Transpose-free fast path: `planes` is state-major (STATE, bs).

    Returns (STATE, bs) = [qt planes ; qtt planes].  Batch is laid out on
    sublanes+lanes as (STATE, n_rows, 128); each grid step streams up to
    row_tile*128 batch elements (HBM-bandwidth bound on v5e/v6e/v7x).
    Lane-aligned bs (multiple of 128) incurs zero padding/copy passes.
    """
    del t  # F is time-independent; kept for API parity.
    ns, bs = planes.shape
    assert ns == STATE
    dtype = planes.dtype

    bs_pad = _round_up(bs, LANE)
    if bs_pad != bs:
        # Zero-pad the ragged lane tail (<=127 elems). Padded lanes may
        # produce Inf/NaN (det == 0) -- harmless, they are sliced away.
        planes = jnp.pad(planes, ((0, 0), (0, bs_pad - bs)))
    n_rows = bs_pad // LANE
    x3 = planes.reshape(STATE, n_rows, LANE)      # free (bitcast) reshape

    row_tile = _choose_row_tile(n_rows, max_row_tile)
    chunk = CHUNK if row_tile % CHUNK == 0 else row_tile
    num_blocks = pl.cdiv(n_rows, row_tile)        # partial last block is OK

    kern = functools.partial(_dae2ode_kernel, m0=float(m[0]), m1=float(m[1]),
                             g=float(g), chunk=chunk)
    itemsize = jnp.dtype(dtype).itemsize
    out3 = pl.pallas_call(
        kern,
        out_shape=jax.ShapeDtypeStruct((STATE, n_rows, LANE), dtype),
        grid=(num_blocks,),
        in_specs=[pl.BlockSpec((STATE, row_tile, LANE), lambda i: (0, i, 0))],
        out_specs=pl.BlockSpec((STATE, row_tile, LANE), lambda i: (0, i, 0)),
        compiler_params=pltpu.CompilerParams(
            dimension_semantics=("parallel",),
            vmem_limit_bytes=32 * 1024 * 1024),
        cost_estimate=pl.CostEstimate(
            flops=50 * bs_pad,
            transcendentals=bs_pad,
            bytes_accessed=2 * STATE * bs_pad * itemsize),
    )(x3)

    out = out3.reshape(STATE, bs_pad)
    if bs_pad != bs:
        out = out[:, :bs]
    return out


def dae2ode_forward(t, coords, *, m=(M0, M1), g=G, max_row_tile=512):
    """PyTorch-API-parity wrapper: coords (bs, 8) -> (bs, 8).

    The boundary transposes here are pure layout plumbing; callers that care
    about peak throughput should use dae2ode_forward_planes with state-major
    (8, bs) data and skip them entirely.
    """
    bs, ns = coords.shape
    assert ns == STATE
    out_planes = dae2ode_forward_planes(t, coords.T, m=m, g=g,
                                        max_row_tile=max_row_tile)
    return out_planes.T


def reference_forward_np(t, coords, m=(M0, M1), g=G):
    """Independent float64 numpy transcription of the PyTorch forward."""
    del t
    c = np.asarray(coords, dtype=np.float64)
    q, qt = c[:, :4], c[:, 4:]
    bs = c.shape[0]
    e0 = np.zeros(bs)
    phi_q = np.stack([
        np.stack([2 * q[:, 0], 2 * q[:, 1], e0, e0], axis=-1),
        np.stack([2 * q[:, 0] - 2 * q[:, 2], 2 * q[:, 1] - 2 * q[:, 3],
                  -2 * q[:, 0] + 2 * q[:, 2], -2 * q[:, 1] + 2 * q[:, 3]],
                 axis=-1),
    ], axis=-2)                                                  # (bs, 2, 4)
    Mmat = np.diag([m[0], m[0], m[1], m[1]])
    Minv = np.broadcast_to(np.linalg.inv(Mmat), (bs, 4, 4))
    F = np.broadcast_to(np.array([0.0, -m[0] * g, 0.0, -m[1] * g]), (bs, 4))
    gamma = np.stack([
        2 * qt[:, 0] ** 2 + 2 * qt[:, 1] ** 2,
        2 * qt[:, 0] * (qt[:, 0] - qt[:, 2]) + 2 * qt[:, 1] * (qt[:, 1] - qt[:, 3])
        - 2 * qt[:, 2] * (qt[:, 0] - qt[:, 2]) - 2 * qt[:, 3] * (qt[:, 1] - qt[:, 3]),
    ], axis=-1)
    phi_q_qt_q_qt = -gamma
    phi_q_Minv = phi_q @ Minv
    L = phi_q_Minv @ np.swapaxes(phi_q, 1, 2)
    R = phi_q_Minv @ F[..., None] - phi_q_qt_q_qt[..., None]
    lam = np.linalg.solve(L, R)
    qtt_R = F[..., None] - np.swapaxes(phi_q, 1, 2) @ lam
    qtt = (Minv @ qtt_R)[..., 0]
    return np.concatenate([qt, qtt], axis=-1)


def _make_inputs(key, bs):
    """Physically consistent coordinates: points on circles of radii L0, L1."""
    k1, k2, k3 = jax.random.split(key, 3)
    th1 = jax.random.uniform(k1, (bs,), minval=-jnp.pi, maxval=jnp.pi)
    th2 = jax.random.uniform(k2, (bs,), minval=-jnp.pi, maxval=jnp.pi)
    q0 = L0 * jnp.sin(th1)
    q1 = -L0 * jnp.cos(th1)
    q2 = q0 + L1 * jnp.sin(th2)
    q3 = q1 - L1 * jnp.cos(th2)
    qt = 0.5 * jax.random.normal(k3, (bs, 4))
    coords = jnp.concatenate(
        [jnp.stack([q0, q1, q2, q3], axis=-1), qt], axis=-1).astype(jnp.float32)
    t = jnp.zeros((bs,), jnp.float32)
    return t, coords


def _check(out, ref, rtol=1e-3, atol=1e-3):
    out = np.asarray(out, dtype=np.float64)
    err = np.max(np.abs(out - ref))
    assert np.allclose(out, ref, rtol=rtol, atol=atol), f"max |err| = {err}"


if __name__ == "__main__":
    key = jax.random.PRNGKey(0)
    k_a, k_b = jax.random.split(key)

    # Small batch: lane padding, single partial-row block, grid = 1.
    t_a, coords_a = _make_inputs(k_a, 8)
    out_a = jax.block_until_ready(jax.jit(dae2ode_forward)(t_a, coords_a))
    assert out_a.shape == (8, STATE)
    _check(out_a, reference_forward_np(t_a, coords_a))

    # Larger batch: multi-block grid (>= 2 steps), ragged lane tail.
    t_b, coords_b = _make_inputs(k_b, 2000)
    out_b = jax.block_until_ready(jax.jit(dae2ode_forward)(t_b, coords_b))
    assert out_b.shape == (2000, STATE)
    _check(out_b, reference_forward_np(t_b, coords_b))

    # Transpose-free state-major fast path, lane-aligned batch (no padding).
    t_c, coords_c = _make_inputs(k_a, 1024)
    out_c = jax.block_until_ready(
        jax.jit(dae2ode_forward_planes)(t_c, coords_c.T))
    assert out_c.shape == (STATE, 1024)
    _check(np.asarray(out_c).T, reference_forward_np(t_c, coords_c))

    print("KERNEL_OK")
</pallas_src>

<mosaic_0001>
module attributes {stable_mosaic.version = 11 : i64} {
  func.func @_dae2ode_kernel(%arg0: i32, %arg1: memref<8x1x128xf32, #tpu.memory_space<vmem>>, %arg2: memref<8x1x128xf32, #tpu.memory_space<vmem>>) attributes {dimension_semantics = [#tpu.dimension_semantics<parallel>], iteration_bounds = array<i64: 1>, scalar_prefetch = 0 : i64, scratch_operands = 0 : i64, tpu.core_type = #tpu.core_type<tc>, window_params = [{transform_indices = @transform_0, window_bounds = array<i64: 8, 1, 128>}, {transform_indices = @transform_1, window_bounds = array<i64: 8, 1, 128>}]} {
    %c0_i32 = arith.constant 0 : i32
    %c1_i32 = arith.constant 1 : i32
    %0 = arith.muli %c0_i32, %c1_i32 : i32
    %1 = tpu.assume_multiple %0, 1 : i32
    %c4 = arith.constant 4 : index
    %2 = arith.index_cast %1 : i32 to index
    %c0 = arith.constant 0 : index
    %3 = vector.load %arg1[%c4, %2, %c0] : memref<8x1x128xf32, #tpu.memory_space<vmem>>, vector<1x1x128xf32>
    %4 = vector.shape_cast %3 : vector<1x1x128xf32> to vector<1x128xf32>
    %c5 = arith.constant 5 : index
    %5 = arith.index_cast %1 : i32 to index
    %c0_0 = arith.constant 0 : index
    %6 = vector.load %arg1[%c5, %5, %c0_0] : memref<8x1x128xf32, #tpu.memory_space<vmem>>, vector<1x1x128xf32>
    %7 = vector.shape_cast %6 : vector<1x1x128xf32> to vector<1x128xf32>
    %c6 = arith.constant 6 : index
    %8 = arith.index_cast %1 : i32 to index
    %c0_1 = arith.constant 0 : index
    %9 = vector.load %arg1[%c6, %8, %c0_1] : memref<8x1x128xf32, #tpu.memory_space<vmem>>, vector<1x1x128xf32>
    %10 = vector.shape_cast %9 : vector<1x1x128xf32> to vector<1x128xf32>
    %c7 = arith.constant 7 : index
    %11 = arith.index_cast %1 : i32 to index
    %c0_2 = arith.constant 0 : index
    %12 = vector.load %arg1[%c7, %11, %c0_2] : memref<8x1x128xf32, #tpu.memory_space<vmem>>, vector<1x1x128xf32>
    %13 = vector.shape_cast %12 : vector<1x1x128xf32> to vector<1x128xf32>
    %c0_3 = arith.constant 0 : index
    %14 = arith.index_cast %1 : i32 to index
    %c0_4 = arith.constant 0 : index
    %15 = vector.load %arg2[%c0_3, %14, %c0_4] : memref<8x1x128xf32, #tpu.memory_space<vmem>>, vector<1x1x128xf32>
    %16 = vector.shape_cast %15 : vector<1x1x128xf32> to vector<1x128xf32>
    %17 = vector.shape_cast %4 : vector<1x128xf32> to vector<1x1x128xf32>
    tpu.vector_store %arg2[%c0_3, %14, %c0_4], %17 {strides = array<i32>} : memref<8x1x128xf32, #tpu.memory_space<vmem>>, vector<1x1x128xf32>,
    %c1 = arith.constant 1 : index
    %18 = arith.index_cast %1 : i32 to index
    %c0_5 = arith.constant 0 : index
    %19 = vector.load %arg2[%c1, %18, %c0_5] : memref<8x1x128xf32, #tpu.memory_space<vmem>>, vector<1x1x128xf32>
    %20 = vector.shape_cast %19 : vector<1x1x128xf32> to vector<1x128xf32>
    %21 = vector.shape_cast %7 : vector<1x128xf32> to vector<1x1x128xf32>
    tpu.vector_store %arg2[%c1, %18, %c0_5], %21 {strides = array<i32>} : memref<8x1x128xf32, #tpu.memory_space<vmem>>, vector<1x1x128xf32>,
    %c2 = arith.constant 2 : index
    %22 = arith.index_cast %1 : i32 to index
    %c0_6 = arith.constant 0 : index
    %23 = vector.load %arg2[%c2, %22, %c0_6] : memref<8x1x128xf32, #tpu.memory_space<vmem>>, vector<1x1x128xf32>
    %24 = vector.shape_cast %23 : vector<1x1x128xf32> to vector<1x128xf32>
    %25 = vector.shape_cast %10 : vector<1x128xf32> to vector<1x1x128xf32>
    tpu.vector_store %arg2[%c2, %22, %c0_6], %25 {strides = array<i32>} : memref<8x1x128xf32, #tpu.memory_space<vmem>>, vector<1x1x128xf32>,
    %c3 = arith.constant 3 : index
    %26 = arith.index_cast %1 : i32 to index
    %c0_7 = arith.constant 0 : index
    %27 = vector.load %arg2[%c3, %26, %c0_7] : memref<8x1x128xf32, #tpu.memory_space<vmem>>, vector<1x1x128xf32>
    %28 = vector.shape_cast %27 : vector<1x1x128xf32> to vector<1x128xf32>
    %29 = vector.shape_cast %13 : vector<1x128xf32> to vector<1x1x128xf32>
    tpu.vector_store %arg2[%c3, %26, %c0_7], %29 {strides = array<i32>} : memref<8x1x128xf32, #tpu.memory_space<vmem>>, vector<1x1x128xf32>,
    %c0_8 = arith.constant 0 : index
    %30 = arith.index_cast %1 : i32 to index
    %c0_9 = arith.constant 0 : index
    %31 = vector.load %arg1[%c0_8, %30, %c0_9] : memref<8x1x128xf32, #tpu.memory_space<vmem>>, vector<1x1x128xf32>
    %32 = vector.shape_cast %31 : vector<1x1x128xf32> to vector<1x128xf32>
    %c1_10 = arith.constant 1 : index
    %33 = arith.index_cast %1 : i32 to index
    %c0_11 = arith.constant 0 : index
    %34 = vector.load %arg1[%c1_10, %33, %c0_11] : memref<8x1x128xf32, #tpu.memory_space<vmem>>, vector<1x1x128xf32>
    %35 = vector.shape_cast %34 : vector<1x1x128xf32> to vector<1x128xf32>
    %c2_12 = arith.constant 2 : index
    %36 = arith.index_cast %1 : i32 to index
    %c0_13 = arith.constant 0 : index
    %37 = vector.load %arg1[%c2_12, %36, %c0_13] : memref<8x1x128xf32, #tpu.memory_space<vmem>>, vector<1x1x128xf32>
    %38 = vector.shape_cast %37 : vector<1x1x128xf32> to vector<1x128xf32>
    %c3_14 = arith.constant 3 : index
    %39 = arith.index_cast %1 : i32 to index
    %c0_15 = arith.constant 0 : index
    %40 = vector.load %arg1[%c3_14, %39, %c0_15] : memref<8x1x128xf32, #tpu.memory_space<vmem>>, vector<1x1x128xf32>
    %41 = vector.shape_cast %40 : vector<1x1x128xf32> to vector<1x128xf32>
    %42 = arith.subf %32, %38 : vector<1x128xf32>
    %43 = arith.subf %35, %41 : vector<1x128xf32>
    %44 = arith.subf %4, %10 : vector<1x128xf32>
    %45 = arith.subf %7, %13 : vector<1x128xf32>
    %46 = arith.mulf %32, %32 : vector<1x128xf32>
    %47 = arith.mulf %35, %35 : vector<1x128xf32>
    %48 = arith.addf %46, %47 : vector<1x128xf32>
    %cst = arith.constant 4.000000e+00 : f32
    %49 = vector.broadcast %cst : f32 to vector<1x128xf32>
    %50 = arith.mulf %49, %48 : vector<1x128xf32>
    %51 = arith.mulf %32, %42 : vector<1x128xf32>
    %52 = arith.mulf %35, %43 : vector<1x128xf32>
    %53 = arith.addf %51, %52 : vector<1x128xf32>
    %cst_16 = arith.constant 4.000000e+00 : f32
    %54 = vector.broadcast %cst_16 : f32 to vector<1x128xf32>
    %55 = arith.mulf %54, %53 : vector<1x128xf32>
    %56 = arith.mulf %42, %42 : vector<1x128xf32>
    %57 = arith.mulf %43, %43 : vector<1x128xf32>
    %58 = arith.addf %56, %57 : vector<1x128xf32>
    %cst_17 = arith.constant 6.000000e+00 : f32
    %59 = vector.broadcast %cst_17 : f32 to vector<1x128xf32>
    %60 = arith.mulf %59, %58 : vector<1x128xf32>
    %61 = arith.mulf %4, %4 : vector<1x128xf32>
    %62 = arith.mulf %7, %7 : vector<1x128xf32>
    %63 = arith.addf %61, %62 : vector<1x128xf32>
    %cst_18 = arith.constant 2.000000e+00 : f32
    %64 = vector.broadcast %cst_18 : f32 to vector<1x128xf32>
    %65 = arith.mulf %64, %63 : vector<1x128xf32>
    %cst_19 = arith.constant 1.960000e+01 : f32
    %66 = vector.broadcast %cst_19 : f32 to vector<1x128xf32>
    %67 = arith.mulf %66, %35 : vector<1x128xf32>
    %68 = arith.subf %65, %67 : vector<1x128xf32>
    %69 = arith.mulf %44, %44 : vector<1x128xf32>
    %70 = arith.mulf %45, %45 : vector<1x128xf32>
    %71 = arith.addf %69, %70 : vector<1x128xf32>
    %cst_20 = arith.constant 2.000000e+00 : f32
    %72 = vector.broadcast %cst_20 : f32 to vector<1x128xf32>
    %73 = arith.mulf %72, %71 : vector<1x128xf32>
    %74 = arith.mulf %50, %60 : vector<1x128xf32>
    %75 = arith.mulf %55, %55 : vector<1x128xf32>
    %76 = arith.subf %74, %75 : vector<1x128xf32>
    %cst_21 = arith.constant 1.000000e+00 : f32
    %77 = vector.broadcast %cst_21 : f32 to vector<1x128xf32>
    %78 = arith.divf %77, %76 : vector<1x128xf32>
    %79 = arith.mulf %60, %68 : vector<1x128xf32>
    %80 = arith.mulf %55, %73 : vector<1x128xf32>
    %81 = arith.subf %79, %80 : vector<1x128xf32>
    %82 = arith.mulf %81, %78 : vector<1x128xf32>
    %83 = arith.mulf %50, %73 : vector<1x128xf32>
    %84 = arith.mulf %55, %68 : vector<1x128xf32>
    %85 = arith.subf %83, %84 : vector<1x128xf32>
    %86 = arith.mulf %85, %78 : vector<1x128xf32>
    %87 = arith.mulf %32, %82 : vector<1x128xf32>
    %88 = arith.mulf %42, %86 : vector<1x128xf32>
    %89 = arith.addf %87, %88 : vector<1x128xf32>
    %cst_22 = arith.constant -2.000000e+00 : f32
    %90 = vector.broadcast %cst_22 : f32 to vector<1x128xf32>
    %91 = arith.mulf %90, %89 : vector<1x128xf32>
    %92 = arith.mulf %35, %82 : vector<1x128xf32>
    %93 = arith.mulf %43, %86 : vector<1x128xf32>
    %94 = arith.addf %92, %93 : vector<1x128xf32>
    %cst_23 = arith.constant 2.000000e+00 : f32
    %95 = vector.broadcast %cst_23 : f32 to vector<1x128xf32>
    %96 = arith.mulf %95, %94 : vector<1x128xf32>
    %cst_24 = arith.constant -9.800000e+00 : f32
    %97 = vector.broadcast %cst_24 : f32 to vector<1x128xf32>
    %98 = arith.subf %97, %96 : vector<1x128xf32>
    %99 = arith.mulf %42, %86 : vector<1x128xf32>
    %cst_25 = arith.constant 1.000000e+00 : f32
    %100 = vector.broadcast %cst_25 : f32 to vector<1x128xf32>
    %101 = arith.mulf %100, %99 : vector<1x128xf32>
    %102 = arith.mulf %43, %86 : vector<1x128xf32>
    %cst_26 = arith.constant 1.000000e+00 : f32
    %103 = vector.broadcast %cst_26 : f32 to vector<1x128xf32>
    %104 = arith.mulf %103, %102 : vector<1x128xf32>
    %cst_27 = arith.constant -9.800000e+00 : f32
    %105 = vector.broadcast %cst_27 : f32 to vector<1x128xf32>
    %106 = arith.addf %105, %104 : vector<1x128xf32>
    %c4_28 = arith.constant 4 : index
    %107 = arith.index_cast %1 : i32 to index
    %c0_29 = arith.constant 0 : index
    %108 = vector.load %arg2[%c4_28, %107, %c0_29] : memref<8x1x128xf32, #tpu.memory_space<vmem>>, vector<1x1x128xf32>
    %109 = vector.shape_cast %108 : vector<1x1x128xf32> to vector<1x128xf32>
    %110 = vector.shape_cast %91 : vector<1x128xf32> to vector<1x1x128xf32>
    tpu.vector_store %arg2[%c4_28, %107, %c0_29], %110 {strides = array<i32>} : memref<8x1x128xf32, #tpu.memory_space<vmem>>, vector<1x1x128xf32>,
    %c5_30 = arith.constant 5 : index
    %111 = arith.index_cast %1 : i32 to index
    %c0_31 = arith.constant 0 : index
    %112 = vector.load %arg2[%c5_30, %111, %c0_31] : memref<8x1x128xf32, #tpu.memory_space<vmem>>, vector<1x1x128xf32>
    %113 = vector.shape_cast %112 : vector<1x1x128xf32> to vector<1x128xf32>
    %114 = vector.shape_cast %98 : vector<1x128xf32> to vector<1x1x128xf32>
    tpu.vector_store %arg2[%c5_30, %111, %c0_31], %114 {strides = array<i32>} : memref<8x1x128xf32, #tpu.memory_space<vmem>>, vector<1x1x128xf32>,
    %c6_32 = arith.constant 6 : index
    %115 = arith.index_cast %1 : i32 to index
    %c0_33 = arith.constant 0 : index
    %116 = vector.load %arg2[%c6_32, %115, %c0_33] : memref<8x1x128xf32, #tpu.memory_space<vmem>>, vector<1x1x128xf32>
    %117 = vector.shape_cast %116 : vector<1x1x128xf32> to vector<1x128xf32>
    %118 = vector.shape_cast %101 : vector<1x128xf32> to vector<1x1x128xf32>
    tpu.vector_store %arg2[%c6_32, %115, %c0_33], %118 {strides = array<i32>} : memref<8x1x128xf32, #tpu.memory_space<vmem>>, vector<1x1x128xf32>,
    %c7_34 = arith.constant 7 : index
    %119 = arith.index_cast %1 : i32 to index
    %c0_35 = arith.constant 0 : index
    %120 = vector.load %arg2[%c7_34, %119, %c0_35] : memref<8x1x128xf32, #tpu.memory_space<vmem>>, vector<1x1x128xf32>
    %121 = vector.shape_cast %120 : vector<1x1x128xf32> to vector<1x128xf32>
    %122 = vector.shape_cast %106 : vector<1x128xf32> to vector<1x1x128xf32>
    tpu.vector_store %arg2[%c7_34, %119, %c0_35], %122 {strides = array<i32>} : memref<8x1x128xf32, #tpu.memory_space<vmem>>, vector<1x1x128xf32>,
    %c1_i32_36 = arith.constant 1 : i32
    return
  }
  func.func @transform_0(%arg0: i32) -> (i32, i32, i32) {
    %c0_i32 = arith.constant 0 : i32
    %c0_i32_0 = arith.constant 0 : i32
    %c0_i32_1 = arith.constant 0 : i32
    return %c0_i32, %arg0, %c0_i32_0 : i32, i32, i32
  }
  func.func @transform_1(%arg0: i32) -> (i32, i32, i32) {
    %c0_i32 = arith.constant 0 : i32
    %c0_i32_0 = arith.constant 0 : i32
    %c0_i32_1 = arith.constant 0 : i32
    return %c0_i32, %arg0, %c0_i32_0 : i32, i32, i32
  }
}

</mosaic_0001>

<bundles_post_ra>
// kernel: dae2ode_forward.1
= control target key start
LH: loop header
LB: loop body
LE: loop exit
PB: predicated region body
PF: predicated region fallthrough
CT: control target
= control target key end

     0   :  { %s186_s0 = inlined_call_operand.vmem [shape: f32[8,1,128], index: 0, kind: input, shape index: {}]   ;;  %s187_s1 = inlined_call_operand.vmem [shape: f32[8,1,128], index: 1, kind: output, shape index: {}]  }
   0x1   :  { %v112_v0 = vld [vmem:[%s186_s0 + $0x4] sm:$0x1]  ;;  %v113_v1 = vld [vmem:[%s186_s0 + $0x5] sm:$0x1]  ;;  %v119_v2 = vld [vmem:[%s186_s0 + $0x1] sm:$0x1] }
   0x2   :  { %20 = vst [vmem:[%s187_s1] sm:$0x1] %v112_v0  ;;  %116 = vst [vmem:[%s187_s1 + $0x1] sm:$0x1] %v113_v1  ;;  %v114_v3 = vld [vmem:[%s186_s0 + $0x6] sm:$0x1]  ;;  %v42_v5 = vmul.f32 %v119_v2, %v119_v2  ;;  %v53_v6 = vmul.f32 %v112_v0, %v112_v0  ;;  %v54_v7 = vmul.f32 %v113_v1, %v113_v1 }
   0x3   :  { %v115_v4 = vld [vmem:[%s186_s0 + $0x7] sm:$0x1]  ;;  %117 = vst [vmem:[%s187_s1 + $0x2] sm:$0x1] %v114_v3  ;;  %v39_v8 = vsub.f32 %v112_v0, %v114_v3  ;;  %v30_v9 = vld [vmem:[%s186_s0] sm:$0x1] }
   0x4   :  { %118 = vst [vmem:[%s187_s1 + $0x3] sm:$0x1] %v115_v4  ;;  %v120_v10 = vld [vmem:[%s186_s0 + $0x2] sm:$0x1]  ;;  %v121_v11 = vld [vmem:[%s186_s0 + $0x3] sm:$0x1]  ;;  %v40_v14 = vsub.f32 %v113_v1, %v115_v4  ;;  %v41_v15 = vmul.f32 %v30_v9, %v30_v9  ;;  %v55_v21 = vadd.f32 %v54_v7, %v53_v6 }
   0x5   :  { %v37_v12 = vsub.f32 %v30_v9, %v120_v10  ;;  %v38_v13 = vsub.f32 %v119_v2, %v121_v11  ;;  %v59_v22 = vmul.f32 %v39_v8, %v39_v8  ;;  %v57_v30 = vmul.f32 19.6, %v119_v2 }
   0x6   :  { %v43_v16 = vadd.f32 %v42_v5, %v41_v15  ;;  %v60_v24 = vmul.f32 %v40_v14, %v40_v14  ;;  %v56_v29 = vmul.f32 2.0, %v55_v21 }
   0x7   :  { %v45_v17 = vmul.f32 %v37_v12, %v30_v9  ;;  %v46_v18 = vmul.f32 %v119_v2, %v38_v13  ;;  %v49_v19 = vmul.f32 %v37_v12, %v37_v12  ;;  %v50_v20 = vmul.f32 %v38_v13, %v38_v13 }
   0x8   :  { %v44_v25 = vmul.f32 4.0, %v43_v16  ;;  %v61_v31 = vadd.f32 %v60_v24, %v59_v22  ;;  %v58_v35 = vsub.f32 %v56_v29, %v57_v30 }
   0x9   :  { %v47_v23 = vadd.f32 %v46_v18, %v45_v17  ;;  %v51_v26 = vadd.f32 %v50_v20, %v49_v19 }
   0xa   :  { %v62_v36 = vmul.f32 2.0, %v61_v31 }
   0xb   :  { %v48_v27 = vmul.f32 4.0, %v47_v23  ;;  %v52_v28 = vmul.f32 6.0, %v51_v26 }
   0xc   :  { %v72_v38 = vmul.f32 %v62_v36, %v44_v25 }
   0xd   :  { %v64_v32 = vmul.f32 %v48_v27, %v48_v27  ;;  %v63_v33 = vmul.f32 %v52_v28, %v44_v25  ;;  %v69_v37 = vmul.f32 %v62_v36, %v48_v27  ;;  %v68_v39 = vmul.f32 %v58_v35, %v52_v28 }
   0xe   :  { %v73_v40 = vmul.f32 %v58_v35, %v48_v27 }
   0xf   :  { %v65_v34 = vsub.f32 %v63_v33, %v64_v32  ;;  %v70_v41 = vsub.f32 %v68_v39, %v69_v37 }
  0x10   :  { %v74_v42 = vsub.f32 %v72_v38, %v73_v40 }
  0x11   :  { %126 = vrcp.f32 %v65_v34 }
  0x1b   :  { %v127_v43 = vpop.eup %126 }
  0x1c   :  { %v71_v44 = vmul.f32 %v127_v43, %v70_v41  ;;  %v75_v45 = vmul.f32 %v127_v43, %v74_v42 }
  0x1e   :  { %v76_v46 = vmul.f32 %v71_v44, %v30_v9  ;;  %v77_v47 = vmul.f32 %v75_v45, %v37_v12  ;;  %v80_v48 = vmul.f32 %v119_v2, %v71_v44  ;;  %v81_v49 = vmul.f32 %v75_v45, %v38_v13 }
  0x20   :  { %v78_v50 = vadd.f32 %v77_v47, %v76_v46  ;;  %124 = vst [vmem:[%s187_s1 + $0x6] sm:$0x1] %v77_v47  ;;  %v82_v51 = vadd.f32 %v81_v49, %v80_v48  ;;  %v85_v52 = vadd.f32 -9.8, %v81_v49 }
  0x22   :  { %v79_v53 = vmul.f32 -2.0, %v78_v50  ;;  %v83_v54 = vmul.f32 2.0, %v82_v51  ;;  %125 = vst [vmem:[%s187_s1 + $0x7] sm:$0x1] %v85_v52 }
  0x24   :  { %122 = vst [vmem:[%s187_s1 + $0x4] sm:$0x1] %v79_v53  ;;  %v84_v55 = vsub.f32 -9.8, %v83_v54 }
  0x26   :  { %123 = vst [vmem:[%s187_s1 + $0x5] sm:$0x1] %v84_v55 }

</bundles_post_ra>
